<compile_context>
chip_gen: v7x
topology: tpu7x:2x2x1
jax: 0.10.0
libtpu: 0.0.40
codegen_flags: <defaults>
</compile_context>

<pallas_src>
import jax
import jax.numpy as jnp
from jax.experimental import pallas as pl
from jax.experimental.pallas import tpu as pltpu

# ---- stand-ins for the original cfg.* values (small, deterministic) ----
STATE_DIMS = (16, 16, 32)            # (S0, S1, S2)
FEAT_DIMS = (4,)                     # conv1 input channels
GRID_SHAPE = (1, 1, 4, 4)
SIZE_DIMS = GRID_SHAPE[2] * GRID_SHAPE[3]   # 16
KSIZE = 3
DILATION = 2
PAD = 2

S0, S1, S2 = STATE_DIMS
CIN = FEAT_DIMS[0]
H, W = S1, S0                        # conv spatial dims (NCHW: H=S1, W=S0)
HW = H * W                           # 256

CPAD = 8                             # Cin 4 -> 8 (sublane-aligned per-tap block)
KC = KSIZE * KSIZE * CPAD            # 72 im2col columns
KPAD = KC + 8                        # 80: col 72 = ones (conv bias), 73..79 = 0
NC = S2                              # 32 conv output channels
NPAD = NC + 8                        # 40: ch 32 = constant bias-carrier, 33..39 = 0


def _size_inference_kernel(xcol_ref, roi_ref, params_ref, out_ref):
    # Packed params: rows [0, KPAD) = conv weights (+ bias row),
    #                rows [KPAD, KPAD+NPAD) = linear head (+ bias row).
    w_conv = params_ref[pl.ds(0, KPAD), :]        # (80, 40)
    w_head = params_ref[pl.ds(KPAD, NPAD), :]     # (40, 40)

    # dilated 3x3 conv as one im2col matmul; bias folded in via ones-col/bias-row
    h = jnp.dot(xcol_ref[...], w_conv, preferred_element_type=jnp.float32)  # (256, 40)
    # F.relu, then torch.mul(size_hidden, rois.permute(2,1,0)) as a lane-dense mask
    h = jnp.maximum(h, 0.0) * roi_ref[...]
    # F.adaptive_max_pool2d(output_size=1): global spatial max per channel
    pooled = jnp.max(h, axis=0, keepdims=True)    # (1, 40); pooled[0, 32] == 1.0
    # nn.Linear(S2, SIZE_DIMS) + ReLU (bias carried by the constant channel 32)
    z = jnp.dot(pooled, w_head, preferred_element_type=jnp.float32)         # (1, 40)
    z = jnp.maximum(z, 0.0)
    # nn.Softmax(dim=1) acts on the singleton middle dim of (1, 1, SIZE_DIMS), so
    # the value is 1 for all finite z.  z*0+1 preserves NaN/Inf propagation
    # without the exp/divide of a literal softmax.
    out_ref[...] = (z[:, :SIZE_DIMS] * 0.0 + 1.0).astype(out_ref.dtype)


def _pack_params(params):
    """Pack conv + linear weights/biases into one sublane-aligned f32 buffer."""
    # conv weight (S2, Cin, 3, 3) -> (kh, kw, ci, co), ci padded 4->8 -> (72, 32)
    w = jnp.transpose(params["conv_w"], (2, 3, 1, 0)).astype(jnp.float32)
    w = jnp.pad(w, ((0, 0), (0, 0), (0, CPAD - CIN), (0, 0)))
    wcol = w.reshape(KC, NC)
    p = jnp.zeros((KPAD + NPAD, NPAD), jnp.float32)
    p = p.at[:KC, :NC].set(wcol)
    p = p.at[KC, :NC].set(params["conv_b"].astype(jnp.float32))   # conv bias row
    p = p.at[KC, NC].set(1.0)                 # bias-carrier channel stays == 1.0
    p = p.at[KPAD:KPAD + NC, :SIZE_DIMS].set(params["lin_w"].T.astype(jnp.float32))
    p = p.at[KPAD + NC, :SIZE_DIMS].set(params["lin_b"].astype(jnp.float32))
    return p


@jax.jit
def size_inference_forward(input_feat, input_roi, params):
    """input_feat: (1, Cin, S1, S0) NCHW; input_roi: any shape with S0*S1 elements."""
    n, cin, h_in, w_in = input_feat.shape
    assert (n, cin, h_in, w_in) == (1, CIN, H, W)

    # ---- glue (all fused under this jit): zero-pad + im2col gather ----
    x = jnp.transpose(input_feat[0], (1, 2, 0)).astype(jnp.float32)    # (H, W, Cin)
    xpad = jnp.pad(x, ((PAD, PAD), (PAD, PAD), (0, CPAD - CIN)))       # (H+4, W+4, 8)
    cols = [
        xpad[kh * DILATION:kh * DILATION + H,
             kw * DILATION:kw * DILATION + W, :].reshape(HW, CPAD)
        for kh in range(KSIZE) for kw in range(KSIZE)
    ]
    # + ones column (carries the conv bias) + zeros to an 8-aligned contraction dim
    xcol = jnp.concatenate(
        cols + [jnp.ones((HW, 1), jnp.float32),
                jnp.zeros((HW, KPAD - KC - 1), jnp.float32)], axis=1)  # (256, 80)

    # ROI multiplier at conv pixel (h, w) is roi_flat[w*S1 + h] (transpose of the
    # roi viewed as (S0, S1)); pre-broadcast lane-dense across channels, with 1.0
    # in the padded channels so the constant bias-carrier channel survives.
    roi_t = input_roi.reshape(S0, S1).T.reshape(HW, 1).astype(jnp.float32)
    roi_b = jnp.concatenate(
        [jnp.broadcast_to(roi_t, (HW, NC)),
         jnp.ones((HW, NPAD - NC), jnp.float32)], axis=1)              # (256, 40)

    # Note: in a long-lived deployment the packed params would be precomputed once
    # outside the per-call path; here they are rebuilt inside the same jit (tiny).
    packed = _pack_params(params)                                      # (120, 40)

    out2d = pl.pallas_call(
        _size_inference_kernel,
        out_shape=jax.ShapeDtypeStruct((1, SIZE_DIMS), jnp.float32),
        grid=(1,),
        in_specs=[
            pl.BlockSpec((HW, KPAD), lambda i: (0, 0)),
            pl.BlockSpec((HW, NPAD), lambda i: (0, 0)),
            pl.BlockSpec((KPAD + NPAD, NPAD), lambda i: (0, 0)),
        ],
        out_specs=pl.BlockSpec((1, SIZE_DIMS), lambda i: (0, 0)),
        compiler_params=pltpu.CompilerParams(
            # single grid step today; would become a "parallel" batch axis if this
            # model were evaluated over many feature/ROI sets (v7x: 2 TensorCores).
            dimension_semantics=("arbitrary",)),
    )(xcol, roi_b, packed)

    # matches the torch module's output shape: (1, 1, SIZE_DIMS)
    return out2d.reshape(1, 1, SIZE_DIMS)


if __name__ == "__main__":
    key = jax.random.PRNGKey(0)
    k1, k2, k3, k4, k5, k6 = jax.random.split(key, 6)

    # deterministic synthetic parameters (shapes from the module's __init__)
    params = {
        "conv_w": 0.1 * jax.random.normal(k3, (S2, CIN, KSIZE, KSIZE), jnp.float32),
        "conv_b": 0.1 * jax.random.normal(k4, (S2,), jnp.float32),
        "lin_w": 0.1 * jax.random.normal(k5, (SIZE_DIMS, S2), jnp.float32),
        "lin_b": 0.1 * jax.random.normal(k6, (SIZE_DIMS,), jnp.float32),
    }

    input_feat = jax.random.normal(k1, (1, CIN, S1, S0), jnp.float32)   # NCHW
    input_roi = jax.random.uniform(k2, (S0, S1), jnp.float32)           # S0*S1 elems

    out = size_inference_forward(input_feat, input_roi, params)
    out = jax.block_until_ready(out)

    assert out.shape == (1, 1, SIZE_DIMS), out.shape
    assert bool(jnp.all(jnp.isfinite(out)))
    # softmax over a singleton dim (torch Softmax(dim=1) on (1,1,SIZE_DIMS)) -> ones
    assert bool(jnp.allclose(out, 1.0)), out
    print("KERNEL_OK")
</pallas_src>

<mosaic_0001>
module attributes {stable_mosaic.version = 11 : i64} {
  func.func @_size_inference_kernel(%arg0: i32, %arg1: memref<256x80xf32, #tpu.memory_space<vmem>>, %arg2: memref<256x40xf32, #tpu.memory_space<vmem>>, %arg3: memref<120x40xf32, #tpu.memory_space<vmem>>, %arg4: memref<1x16xf32, #tpu.memory_space<vmem>>) attributes {dimension_semantics = [#tpu.dimension_semantics<arbitrary>], iteration_bounds = array<i64: 1>, scalar_prefetch = 0 : i64, scratch_operands = 0 : i64, tpu.core_type = #tpu.core_type<tc>, window_params = [{pipeline_mode = #tpu.pipeline_mode<synchronous>, transform_indices = @transform_0, window_bounds = array<i64: 256, 80>}, {pipeline_mode = #tpu.pipeline_mode<synchronous>, transform_indices = @transform_1, window_bounds = array<i64: 256, 40>}, {pipeline_mode = #tpu.pipeline_mode<synchronous>, transform_indices = @transform_2, window_bounds = array<i64: 120, 40>}, {pipeline_mode = #tpu.pipeline_mode<synchronous>, transform_indices = @transform_3, window_bounds = array<i64: 1, 16>}]} {
    %c0 = arith.constant 0 : index
    %c0_0 = arith.constant 0 : index
    %0 = vector.load %arg3[%c0, %c0_0] : memref<120x40xf32, #tpu.memory_space<vmem>>, vector<80x40xf32>
    %c80 = arith.constant 80 : index
    %c0_1 = arith.constant 0 : index
    %1 = vector.load %arg3[%c80, %c0_1] : memref<120x40xf32, #tpu.memory_space<vmem>>, vector<40x40xf32>
    %c0_2 = arith.constant 0 : index
    %c0_3 = arith.constant 0 : index
    %2 = vector.load %arg1[%c0_2, %c0_3] : memref<256x80xf32, #tpu.memory_space<vmem>>, vector<256x80xf32>
    %cst = arith.constant dense<0.000000e+00> : vector<256x40xf32>
    %3 = tpu.matmul %2, %0, %cst {dimension_numbers = #tpu.dot_dimension_numbers<[1], [0], [0], [1], [0, 0, 1, 1], [], []>} : vector<256x80xf32>, vector<80x40xf32>, vector<256x40xf32> -> vector<256x40xf32>
    %cst_4 = arith.constant 0.000000e+00 : f32
    %4 = vector.broadcast %cst_4 : f32 to vector<256x40xf32>
    %5 = arith.maximumf %3, %4 : vector<256x40xf32>
    %c0_5 = arith.constant 0 : index
    %c0_6 = arith.constant 0 : index
    %6 = vector.load %arg2[%c0_5, %c0_6] : memref<256x40xf32, #tpu.memory_space<vmem>>, vector<256x40xf32>
    %7 = arith.mulf %5, %6 : vector<256x40xf32>
    %cst_7 = arith.constant dense<0xFF800000> : vector<40xf32>
    %8 = vector.multi_reduction <maximumf>, %7, %cst_7 [0] : vector<256x40xf32> to vector<40xf32>
    %9 = vector.shape_cast %8 : vector<40xf32> to vector<1x40xf32>
    %cst_8 = arith.constant dense<0.000000e+00> : vector<1x40xf32>
    %10 = tpu.matmul %9, %1, %cst_8 {dimension_numbers = #tpu.dot_dimension_numbers<[1], [0], [0], [1], [0, 0, 1, 1], [], []>} : vector<1x40xf32>, vector<40x40xf32>, vector<1x40xf32> -> vector<1x40xf32>
    %cst_9 = arith.constant 0.000000e+00 : f32
    %11 = vector.broadcast %cst_9 : f32 to vector<1x40xf32>
    %12 = arith.maximumf %10, %11 : vector<1x40xf32>
    %13 = vector.extract_strided_slice %12 {offsets = [0, 0], sizes = [1, 16], strides = [1, 1]} : vector<1x40xf32> to vector<1x16xf32>
    %cst_10 = arith.constant 0.000000e+00 : f32
    %14 = vector.broadcast %cst_10 : f32 to vector<1x16xf32>
    %15 = arith.mulf %13, %14 : vector<1x16xf32>
    %cst_11 = arith.constant 1.000000e+00 : f32
    %16 = vector.broadcast %cst_11 : f32 to vector<1x16xf32>
    %17 = arith.addf %15, %16 : vector<1x16xf32>
    %c0_12 = arith.constant 0 : index
    %c0_13 = arith.constant 0 : index
    %18 = vector.load %arg4[%c0_12, %c0_13] : memref<1x16xf32, #tpu.memory_space<vmem>>, vector<1x16xf32>
    tpu.vector_store %arg4[%c0_12, %c0_13], %17 {strides = array<i32>} : memref<1x16xf32, #tpu.memory_space<vmem>>, vector<1x16xf32>,
    return
  }
  func.func @transform_0(%arg0: i32) -> (i32, i32) {
    %c0_i32 = arith.constant 0 : i32
    %c0_i32_0 = arith.constant 0 : i32
    %c0_i32_1 = arith.constant 0 : i32
    return %c0_i32, %c0_i32_0 : i32, i32
  }
  func.func @transform_1(%arg0: i32) -> (i32, i32) {
    %c0_i32 = arith.constant 0 : i32
    %c0_i32_0 = arith.constant 0 : i32
    %c0_i32_1 = arith.constant 0 : i32
    return %c0_i32, %c0_i32_0 : i32, i32
  }
  func.func @transform_2(%arg0: i32) -> (i32, i32) {
    %c0_i32 = arith.constant 0 : i32
    %c0_i32_0 = arith.constant 0 : i32
    %c0_i32_1 = arith.constant 0 : i32
    return %c0_i32, %c0_i32_0 : i32, i32
  }
  func.func @transform_3(%arg0: i32) -> (i32, i32) {
    %c0_i32 = arith.constant 0 : i32
    %c0_i32_0 = arith.constant 0 : i32
    %c0_i32_1 = arith.constant 0 : i32
    return %c0_i32, %c0_i32_0 : i32, i32
  }
}

</mosaic_0001>

<bundles_post_ra>
// kernel: size_inference_forward.1
= control target key start
LH: loop header
LB: loop body
LE: loop exit
PB: predicated region body
PF: predicated region fallthrough
CT: control target
= control target key end

     0   :  { %vm62_vm0 = vcmask 654336   ;;  %s1254_s0 = inlined_call_operand.vmem [shape: f32[256,80], index: 0, kind: input, shape index: {}]   ;;  %s1255_s1 = inlined_call_operand.vmem [shape: f32[256,40], index: 1, kind: input, shape index: {}]   ;;  %s1256_s2 = inlined_call_operand.vmem [shape: f32[120,40], index: 2, kind: input, shape index: {}]   ;;  %s1257_s3 = inlined_call_operand.hbm [shape: f32[1,16], index: 3, kind: output, shape index: {}]  }
   0x1   :  { %v15_v0 = vld [vmem:[%s1256_s2] sm:$0xff]  ;;  %v16_v1 = vld [vmem:[%s1256_s2 + $0x8] sm:$0xff]  ;;  %v17_v2 = vld [vmem:[%s1256_s2 + $0x10] sm:$0xff] }
   0x2   :  { %v804_v3 = vpack.c.bf16 %v16_v1, %v15_v0  ;;  %v18_v4 = vld [vmem:[%s1256_s2 + $0x18] sm:$0xff]  ;;  %v19_v6 = vld [vmem:[%s1256_s2 + $0x20] sm:$0xff]  ;;  %v20_v7 = vld [vmem:[%s1256_s2 + $0x28] sm:$0xff] }
   0x3   :  { %v808_v5 = vpack.c.bf16 %v18_v4, %v17_v2  ;;  %v30_v8 = vld [vmem:[%s1254_s0] sm:$0xff]  ;;  %v812_v9 = vpack.c.bf16 %v20_v7, %v19_v6  ;;  %v48_v10 = vld [vmem:[%s1254_s0 + $0x90] sm:$0xff]  ;;  %v22_v12 = vld [vmem:[%s1256_s2 + $0x38] sm:$0xff] }
   0x4   :  { %805 = vmatprep.subr.bf16.mxu0 %v804_v3  ;;  %830 = vmatprep.subr.bf16.mxu1 %v804_v3  ;;  %v21_v11 = vld [vmem:[%s1256_s2 + $0x30] sm:$0xff]  ;;  %v23_v14 = vld [vmem:[%s1256_s2 + $0x40] sm:$0xff]  ;;  %v24_v15 = vld [vmem:[%s1256_s2 + $0x48] sm:$0xff] }
   0x5   :  { %807 = vmatpush3.bf16.msra.mxu0 %v804_v3  ;;  %835 = vmatpush3.bf16.msra.mxu1 %v804_v3  ;;  %v816_v13 = vpack.c.bf16 %v22_v12, %v21_v11  ;;  %v820_v16 = vpack.c.bf16 %v24_v15, %v23_v14 }
   0x6   :  { %809 = vmatprep.subr.bf16.mxu0 %v808_v5  ;;  %831 = vmatprep.subr.bf16.mxu1 %v808_v5 }
   0x7   :  { %743 = vmatprep.mubr.msk.f32.mxu0 %vm62_vm0, %v30_v8  ;;  %770 = vmatprep.mubr.msk.f32.mxu1 %vm62_vm0, %v48_v10 }
   0x9   :  { %811 = vmatpush3.bf16.msra.mxu0 %v808_v5  ;;  %836 = vmatpush3.bf16.msra.mxu1 %v808_v5 }
   0xa   :  { %813 = vmatprep.subr.bf16.mxu0 %v812_v9  ;;  %832 = vmatprep.subr.bf16.mxu1 %v812_v9 }
   0xd   :  { %815 = vmatpush3.bf16.msra.mxu0 %v812_v9  ;;  %837 = vmatpush3.bf16.msra.mxu1 %v812_v9 }
   0xe   :  { %817 = vmatprep.subr.bf16.mxu0 %v816_v13  ;;  %833 = vmatprep.subr.bf16.mxu1 %v816_v13 }
   0xf   :  { %8 = vsyncpa [#allocation3], 0  ;;  %v31_v17 = vld [vmem:[%s1254_s0 + $0x8] sm:$0xff]  ;;  %v49_v18 = vld [vmem:[%s1254_s0 + $0x98] sm:$0xff]  ;;  %v868_v49 = vmov 0.0|0.0   ;;  %v869_v54 = vmov 0.0  }
  0x10   :  { %v32_v19 = vld [vmem:[%s1254_s0 + $0x10] sm:$0xff]  ;;  %v50_v20 = vld [vmem:[%s1254_s0 + $0xa0] sm:$0xff]  ;;  %v33_v21 = vld [vmem:[%s1254_s0 + $0x18] sm:$0xff]  ;;  %vm870_vm1 = vmmov 0   ;;  %vm480_vm2 = vcmask 326656   ;;  %vm626_vm3 = vcmask 122880  }
  0x11   :  { %819 = vmatpush3.bf16.msra.mxu0 %v816_v13  ;;  %838 = vmatpush3.bf16.msra.mxu1 %v816_v13  ;;  %v51_v22 = vld [vmem:[%s1254_s0 + $0xa8] sm:$0xff]  ;;  %v34_v23 = vld [vmem:[%s1254_s0 + $0x20] sm:$0xff]  ;;  %v52_v24 = vld [vmem:[%s1254_s0 + $0xb0] sm:$0xff] }
  0x12   :  { %821 = vmatprep.subr.bf16.mxu0 %v820_v16  ;;  %834 = vmatprep.subr.bf16.mxu1 %v820_v16  ;;  %v35_v25 = vld [vmem:[%s1254_s0 + $0x28] sm:$0xff]  ;;  %v53_v26 = vld [vmem:[%s1254_s0 + $0xb8] sm:$0xff]  ;;  %v36_v27 = vld [vmem:[%s1254_s0 + $0x30] sm:$0xff] }
  0x13   :  { %v54_v28 = vld [vmem:[%s1254_s0 + $0xc0] sm:$0xff]  ;;  %v37_v29 = vld [vmem:[%s1254_s0 + $0x38] sm:$0xff]  ;;  %v55_v30 = vld [vmem:[%s1254_s0 + $0xc8] sm:$0xff] }
  0x14   :  { %v38_v31 = vld [vmem:[%s1254_s0 + $0x40] sm:$0xff]  ;;  %v56_v32 = vld [vmem:[%s1254_s0 + $0xd0] sm:$0xff]  ;;  %v39_v33 = vld [vmem:[%s1254_s0 + $0x48] sm:$0xff] }
  0x15   :  { %823 = vmatpush3.bf16.msra.mxu0 %v820_v16  ;;  %839 = vmatpush3.bf16.msra.mxu1 %v820_v16  ;;  %v57_v34 = vld [vmem:[%s1254_s0 + $0xd8] sm:$0xff]  ;;  %v40_v35 = vld [vmem:[%s1254_s0 + $0x50] sm:$0xff]  ;;  %v58_v36 = vld [vmem:[%s1254_s0 + $0xe0] sm:$0xff] }
  0x16   :  { %v41_v37 = vld [vmem:[%s1254_s0 + $0x58] sm:$0xff]  ;;  %v59_v38 = vld [vmem:[%s1254_s0 + $0xe8] sm:$0xff]  ;;  %v42_v39 = vld [vmem:[%s1254_s0 + $0x60] sm:$0xff]  ;;  %824 = vmatprep.subr.bf16.mxu1 %v868_v49 }
  0x17   :  { %v60_v40 = vld [vmem:[%s1254_s0 + $0xf0] sm:$0xff]  ;;  %v43_v41 = vld [vmem:[%s1254_s0 + $0x68] sm:$0xff]  ;;  %v61_v42 = vld [vmem:[%s1254_s0 + $0xf8] sm:$0xff] }
  0x18   :  { %744 = vmatmul.mubr.msk.f32.vlgmr.msra.gmra.mrb[0].mxu0 %vm62_vm0, %v31_v17  ;;  %771 = vmatmul.mubr.msk.f32.vlgmr.msra.gmra.mrb[0].mxu1 %vm62_vm0, %v49_v18  ;;  %v44_v43 = vld [vmem:[%s1254_s0 + $0x70] sm:$0xff]  ;;  %v45_v44 = vld [vmem:[%s1254_s0 + $0x78] sm:$0xff]  ;;  %v46_v45 = vld [vmem:[%s1254_s0 + $0x80] sm:$0xff] }
  0x19   :  { %746 = vmatprep.mubr.msk.f32.mxu0 %vm62_vm0, %v32_v19  ;;  %773 = vmatprep.mubr.msk.f32.mxu1 %vm62_vm0, %v50_v20  ;;  %v47_v46 = vld [vmem:[%s1254_s0 + $0x88] sm:$0xff]  ;;  %v25_v47 = vld [vmem:[%s1256_s2 + $0x50] sm:$0xff]  ;;  %v26_v48 = vld [vmem:[%s1256_s2 + $0x58] sm:$0xff] }
  0x1a   :  { %v825_v50 = vpack.c.bf16 %v26_v48, %v25_v47  ;;  %v27_v51 = vld [vmem:[%s1256_s2 + $0x60] sm:$0xff]  ;;  %v28_v52 = vld [vmem:[%s1256_s2 + $0x68] sm:$0xff]  ;;  %v29_v55 = vld [vmem:[%s1256_s2 + $0x70] sm:$0xff] }
  0x1b   :  { %v828_v53 = vpack.c.bf16 %v28_v52, %v27_v51  ;;  %v417_v63 = vld [vmem:[%s1255_s1 + $0x8] sm:$0xff]  ;;  %v416_v3 = vld [vmem:[%s1255_s1] sm:$0xff]  ;;  %v419_v14 = vld [vmem:[%s1255_s1 + $0x18] sm:$0xff] }
  0x1c   :  { %747 = vmatmul.mubr.msk.f32.gmra.mrb[2].mxu0 %vm62_vm0, %v33_v21  ;;  %774 = vmatmul.mubr.msk.f32.gmra.mrb[2].mxu1 %vm62_vm0, %v51_v22  ;;  %v421_v6 = vld [vmem:[%s1255_s1 + $0x28] sm:$0xff]  ;;  %v420_v12 = vld [vmem:[%s1255_s1 + $0x20] sm:$0xff]  ;;  %v418_v17 = vld [vmem:[%s1255_s1 + $0x10] sm:$0xff] }
  0x1d   :  { %749 = vmatprep.mubr.msk.f32.mxu0 %vm62_vm0, %v34_v23  ;;  %776 = vmatprep.mubr.msk.f32.mxu1 %vm62_vm0, %v52_v24  ;;  %v423_v22 = vld [vmem:[%s1255_s1 + $0x38] sm:$0xff] }
  0x1e   :  { %826 = vmatpush3.bf16.msra.mxu1 %v825_v50 }
  0x1f   :  { %827 = vmatprep.subr.bf16.mxu1 %v868_v49 }
  0x20   :  { %750 = vmatmul.mubr.msk.f32.gmra.mrb[4].mxu0 %vm62_vm0, %v35_v25  ;;  %777 = vmatmul.mubr.msk.f32.gmra.mrb[4].mxu1 %vm62_vm0, %v53_v26 }
  0x21   :  { %752 = vmatprep.mubr.msk.f32.mxu0 %vm62_vm0, %v36_v27  ;;  %779 = vmatprep.mubr.msk.f32.mxu1 %vm62_vm0, %v54_v28 }
  0x22   :  { %829 = vmatpush3.bf16.msra.mxu1 %v828_v53  ;;  %v435_v53 = vld [vmem:[%s1255_s1 + $0x98] sm:$0xff] }
  0x23   :  { %799 = vmatprep.subr.mxu1 %v869_v54 }
  0x24   :  { %753 = vmatmul.mubr.msk.f32.gmra.mrb[6].mxu0 %vm62_vm0, %v37_v29  ;;  %780 = vmatmul.mubr.msk.f32.gmra.mrb[6].mxu1 %vm62_vm0, %v55_v30  ;;  %v422_v29 = vld [vmem:[%s1255_s1 + $0x30] sm:$0xff] }
  0x25   :  { %755 = vmatprep.mubr.msk.f32.mxu0 %vm62_vm0, %v38_v31  ;;  %782 = vmatprep.mubr.msk.f32.mxu1 %vm62_vm0, %v56_v32 }
  0x26   :  { %800 = vmatpush3.msra.mxu1 %v29_v55 }
  0x28   :  { %756 = vmatmul.mubr.msk.f32.gmra.mrb[8].mxu0 %vm62_vm0, %v39_v33  ;;  %783 = vmatmul.mubr.msk.f32.gmra.mrb[8].mxu1 %vm62_vm0, %v57_v34 }
  0x29   :  { %758 = vmatprep.mubr.msk.f32.mxu0 %vm62_vm0, %v40_v35  ;;  %785 = vmatprep.mubr.msk.f32.mxu1 %vm62_vm0, %v58_v36 }
  0x2c   :  { %759 = vmatmul.mubr.msk.f32.gmra.mrb[10].mxu0 %vm62_vm0, %v41_v37  ;;  %786 = vmatmul.mubr.msk.f32.gmra.mrb[10].mxu1 %vm62_vm0, %v59_v38 }
  0x2d   :  { %761 = vmatprep.mubr.msk.f32.mxu0 %vm62_vm0, %v42_v39  ;;  %788 = vmatprep.mubr.msk.f32.mxu1 %vm62_vm0, %v60_v40  ;;  %v425_v39 = vld [vmem:[%s1255_s1 + $0x48] sm:$0xff]  ;;  %v424_v40 = vld [vmem:[%s1255_s1 + $0x40] sm:$0xff] }
  0x30   :  { %762 = vmatmul.mubr.msk.f32.gmra.mrb[12].mxu0 %vm62_vm0, %v43_v41  ;;  %789 = vmatmul.mubr.msk.f32.gmra.mrb[12].mxu1 %vm62_vm0, %v61_v42 }
  0x31   :  { %764 = vmatprep.mubr.msk.f32.mxu0 %vm62_vm0, %v44_v43  ;;  %801 = vmatprep.mubr.msk.f32.mxu1 %vm870_vm1, %v869_v54 }
  0x34   :  { %765 = vmatmul.mubr.msk.f32.gmra.mrb[14].mxu0 %vm62_vm0, %v45_v44 }
  0x35   :  { %767 = vmatprep.mubr.msk.f32.mxu0 %vm62_vm0, %v46_v45 }
  0x38   :  { %768 = vmatmul.mubr.msk.f32.gmra.mrb[16].mxu0 %vm62_vm0, %v47_v46 }
  0xeb   :  { %v745_v56 = vpop.f32.mrb[0].mxu0  ;;  %v1065_v57 = vpop.f32.mrb[0].mxu1 }
  0xec   :  { %v225_v58 = vpop.f32.mrb[1].mxu0  ;;  %v1067_v59 = vpop.f32.mrb[1].mxu1  ;;  %v385_v60 = vmax.f32 %v745_v56, 0.0  ;;  %v403_v44 = vmax.f32 %v1065_v57, 0.0  ;;  %v434_v56 = vld [vmem:[%s1255_s1 + $0x90] sm:$0xff] }
  0xed   :  { %v384_v0 = vmax.f32 %v225_v58, 0.0  ;;  %v402_v54 = vmax.f32 %v1067_v59, 0.0 }
  0xee   :  { %v449_v4 = vmul.f32 %v417_v63, %v385_v60  ;;  %v437_v60 = vld [vmem:[%s1255_s1 + $0xa8] sm:$0xff]  ;;  %v427_v63 = vld [vmem:[%s1255_s1 + $0x58] sm:$0xff] }
  0xef   :  { %v748_v61 = vpop.f32.mrb[2].mxu0  ;;  %v1069_v62 = vpop.f32.mrb[2].mxu1  ;;  %v448_v8 = vmul.f32 %v416_v3, %v384_v0 }
  0xf0   :  { %v235_v1 = vpop.f32.mrb[3].mxu0  ;;  %v1074_v2 = vpop.f32.mrb[3].mxu1  ;;  %v387_v9 = vmax.f32 %v748_v61, 0.0  ;;  %v482_v19 = vsel %vm480_vm2, %v449_v4, -inf  ;;  %v405_v58 = vmax.f32 %v1069_v62, 0.0  ;;  %v426_v62 = vld [vmem:[%s1255_s1 + $0x50] sm:$0xff] }
  0xf1   :  { %v386_v15 = vmax.f32 %v235_v1, 0.0  ;;  %v481_v24 = vsel %vm480_vm2, %v448_v8, -inf  ;;  %v404_v1 = vmax.f32 %v1074_v2, 0.0 }
  0xf2   :  { %v451_v25 = vmul.f32 %v419_v14, %v387_v9 }
  0xf3   :  { %v751_v5 = vpop.f32.mrb[4].mxu0  ;;  %v1082_v7 = vpop.f32.mrb[4].mxu1  ;;  %v450_v31 = vmul.f32 %v418_v17, %v386_v15 }
  0xf4   :  { %v389_v10 = vmax.f32 %v751_v5, 0.0  ;;  %v245_v11 = vpop.f32.mrb[5].mxu0  ;;  %v1087_v13 = vpop.f32.mrb[5].mxu1  ;;  %v484_v42 = vsel %vm480_vm2, %v451_v25, -inf  ;;  %v407_v15 = vmax.f32 %v1082_v7, 0.0  ;;  %v438_v7 = vld [vmem:[%s1255_s1 + $0xb0] sm:$0xff] }
  0xf5   :  { %v388_v16 = vmax.f32 %v245_v11, 0.0  ;;  %v483_v48 = vsel %vm480_vm2, %v450_v31, -inf }
  0xf6   :  { %v453_v18 = vmul.f32 %v421_v6, %v389_v10  ;;  %v467_v6 = vmul.f32 %v435_v53, %v403_v44  ;;  %v436_v10 = vld [vmem:[%s1255_s1 + $0xa0] sm:$0xff] }
  0xf7   :  { %v452_v20 = vmul.f32 %v420_v12, %v388_v16  ;;  %v754_v21 = vpop.f32.mrb[6].mxu0  ;;  %v1099_v23 = vpop.f32.mrb[6].mxu1  ;;  %v466_v12 = vmul.f32 %v434_v56, %v402_v54  ;;  %v469_v16 = vmul.f32 %v437_v60, %v405_v58 }
  0xf8   :  { %v487_v26 = vsel %vm480_vm2, %v453_v18, -inf  ;;  %v391_v27 = vmax.f32 %v754_v21, 0.0  ;;  %v255_v28 = vpop.f32.mrb[7].mxu0  ;;  %v1106_v30 = vpop.f32.mrb[7].mxu1  ;;  %v439_v18 = vld [vmem:[%s1255_s1 + $0xb8] sm:$0xff]  ;;  %v429_v21 = vld [vmem:[%s1255_s1 + $0x68] sm:$0xff] }
  0xf9   :  { %v488_v32 = vmax.f32 %v482_v19, %v487_v26  ;;  %v485_v33 = vsel %vm480_vm2, %v452_v20, -inf  ;;  %v390_v34 = vmax.f32 %v255_v28, 0.0  ;;  %v406_v19 = vmax.f32 %v1087_v13, 0.0  ;;  %v428_v28 = vld [vmem:[%s1255_s1 + $0x60] sm:$0xff] }
  0xfa   :  { %v486_v35 = vmax.f32 %v481_v24, %v485_v33  ;;  %v455_v36 = vmul.f32 %v423_v22, %v391_v27  ;;  %v468_v24 = vmul.f32 %v436_v10, %v404_v1 }
  0xfb   :  { %v454_v37 = vmul.f32 %v422_v29, %v390_v34  ;;  %v757_v38 = vpop.f32.mrb[8].mxu0  ;;  %v1115_v41 = vpop.f32.mrb[8].mxu1  ;;  %v515_v29 = vsel %vm480_vm2, %v467_v6, -inf  ;;  %v513_v34 = vsel %vm480_vm2, %v466_v12, -inf  ;;  %v408_v6 = vmax.f32 %v1106_v30, 0.0  ;;  %v432_v12 = vld [vmem:[%s1255_s1 + $0x80] sm:$0xff] }
  0xfc   :  { %v491_v43 = vsel %vm480_vm2, %v455_v36, -inf  ;;  %v393_v45 = vmax.f32 %v757_v38, 0.0  ;;  %v265_v46 = vpop.f32.mrb[9].mxu0  ;;  %v1120_v47 = vpop.f32.mrb[9].mxu1  ;;  %v471_v36 = vmul.f32 %v439_v18, %v407_v15  ;;  %v1174_v38 = vsel %vm480_vm2, %v469_v16, -inf }
  0xfd   :  { %v492_v49 = vmax.f32 %v484_v42, %v491_v43  ;;  %v489_v50 = vsel %vm480_vm2, %v454_v37, -inf  ;;  %v392_v51 = vmax.f32 %v265_v46, 0.0  ;;  %v409_v42 = vmax.f32 %v1099_v23, 0.0  ;;  %v441_v43 = vld [vmem:[%s1255_s1 + $0xc8] sm:$0xff]  ;;  %v430_v23 = vld [vmem:[%s1255_s1 + $0x70] sm:$0xff] }
  0xfe   :  { %v490_v52 = vmax.f32 %v483_v48, %v489_v50  ;;  %v457_v55 = vmul.f32 %v425_v39, %v393_v45  ;;  %v470_v39 = vmul.f32 %v438_v7, %v406_v19  ;;  %v431_v45 = vld [vmem:[%s1255_s1 + $0x78] sm:$0xff]  ;;  %v1184_v46 = vsel %vm480_vm2, %v468_v24, -inf }
  0xff   :  { %v456_v57 = vmul.f32 %v424_v40, %v392_v51  ;;  %v760_v61 = vpop.f32.mrb[10].mxu0  ;;  %v1138_v0 = vpop.f32.mrb[10].mxu1  ;;  %v411_v51 = vmax.f32 %v1115_v41, 0.0  ;;  %v410_v56 = vmax.f32 %v1120_v47, 0.0  ;;  %v442_v41 = vld [vmem:[%s1255_s1 + $0xd0] sm:$0xff]  ;;  %v447_v47 = vld [vmem:[%s1255_s1 + $0xf8] sm:$0xff] }
 0x100   :  { %v495_v59 = vsel %vm480_vm2, %v457_v55, -inf  ;;  %v395_v3 = vmax.f32 %v760_v61, 0.0  ;;  %v275_v4 = vpop.f32.mrb[11].mxu0  ;;  %v1145_v5 = vpop.f32.mrb[11].mxu1  ;;  %v443_v55 = vld [vmem:[%s1255_s1 + $0xd8] sm:$0xff] }
 0x101   :  { %v1147_v8 = vmax.f32 %v488_v32, %v495_v59  ;;  %v493_v9 = vsel %vm480_vm2, %v456_v57, -inf  ;;  %v394_v11 = vmax.f32 %v275_v4, 0.0  ;;  %v523_v57 = vsel %vm480_vm2, %v471_v36, -inf  ;;  %v433_v4 = vld [vmem:[%s1255_s1 + $0x88] sm:$0xff] }
 0x102   :  { %v1153_v2 = vmax.f32 %v486_v35, %v493_v9  ;;  %v459_v14 = vmul.f32 %v427_v63, %v395_v3  ;;  %v521_v63 = vsel %vm480_vm2, %v470_v39, -inf  ;;  %v473_v59 = vmul.f32 %v441_v43, %v409_v42 }
 0x103   :  { %v458_v17 = vmul.f32 %v426_v62, %v394_v11  ;;  %v763_v20 = vpop.f32.mrb[12].mxu0  ;;  %v790_v22 = vpop.f32.mrb[12].mxu1  ;;  %v475_v9 = vmul.f32 %v443_v55, %v411_v51  ;;  %v474_v16 = vmul.f32 %v442_v41, %v410_v56  ;;  %v412_v7 = vmax.f32 %v1145_v5, 0.0 }
 0x104   :  { %v499_v25 = vsel %vm480_vm2, %v459_v14, -inf  ;;  %v397_v26 = vmax.f32 %v763_v20, 0.0  ;;  %v285_v27 = vpop.f32.mrb[13].mxu0  ;;  %v375_v13 = vpop.f32.mrb[13].mxu1  ;;  %v415_v61 = vmax.f32 %v790_v22, 0.0  ;;  %v440_v14 = vld [vmem:[%s1255_s1 + $0xc0] sm:$0xff] }
 0x105   :  { %v500_v31 = vmax.f32 %v492_v49, %v499_v25  ;;  %v497_v32 = vsel %vm480_vm2, %v458_v17, -inf  ;;  %v396_v33 = vmax.f32 %v285_v27, 0.0  ;;  %v414_v62 = vmax.f32 %v375_v13, 0.0  ;;  %v445_v25 = vld [vmem:[%s1255_s1 + $0xe8] sm:$0xff] }
 0x106   :  { %v498_v35 = vmax.f32 %v490_v52, %v497_v32  ;;  %v461_v37 = vmul.f32 %v429_v21, %v397_v26  ;;  %v413_v20 = vmax.f32 %v1138_v0, 0.0  ;;  %v479_v21 = vmul.f32 %v447_v47, %v415_v61  ;;  %v444_v0 = vld [vmem:[%s1255_s1 + $0xe0] sm:$0xff] }
 0x107   :  { %v460_v40 = vmul.f32 %v428_v28, %v396_v33  ;;  %v766_v44 = vpop.f32.mrb[14].mxu0  ;;  %v472_v27 = vmul.f32 %v440_v14, %v408_v6  ;;  %v531_v13 = vsel %vm480_vm2, %v475_v9, -inf  ;;  %v476_v42 = vmul.f32 %v444_v0, %v412_v7 }
 0x108   :  { %v503_v48 = vsel %vm480_vm2, %v461_v37, -inf  ;;  %v399_v49 = vmax.f32 %v766_v44, 0.0  ;;  %v295_v50 = vpop.f32.mrb[15].mxu0  ;;  %v477_v5 = vmul.f32 %v445_v25, %v413_v20  ;;  %v539_v39 = vsel %vm480_vm2, %v479_v21, -inf }
 0x109   :  { %v504_v52 = vmax.f32 %v1147_v8, %v503_v48  ;;  %v501_v53 = vsel %vm480_vm2, %v460_v40, -inf  ;;  %v398_v54 = vmax.f32 %v295_v50, 0.0  ;;  %v527_v44 = vsel %vm480_vm2, %v473_v59, -inf }
 0x10a   :  { %v502_v58 = vmax.f32 %v1153_v2, %v501_v53  ;;  %v463_v60 = vmul.f32 %v431_v45, %v399_v49  ;;  %v446_v2 = vld [vmem:[%s1255_s1 + $0xf0] sm:$0xff]  ;;  %v525_v49 = vsel %vm480_vm2, %v472_v27, -inf  ;;  %v535_v51 = vsel %vm480_vm2, %v477_v5, -inf  ;;  %s871_s1 = smov [#allocation2]  }
 0x10b   :  { %v462_v1 = vmul.f32 %v430_v23, %v398_v54  ;;  %v769_v3 = vpop.f32.mrb[16].mxu0  ;;  %v478_v26 = vmul.f32 %v446_v2, %v414_v62  ;;  %v533_v55 = vsel %vm480_vm2, %v476_v42, -inf  ;;  %s634_s29 = sshll.u32 %s871_s1, 4  ;;  %s635_s29 = int_to_ptr.vmem [resolvable:$true] %s634_s29 }
 0x10c   :  { %v507_v8 = vsel %vm480_vm2, %v463_v60, -inf  ;;  %v401_v10 = vmax.f32 %v769_v3, 0.0  ;;  %v305_v11 = vpop.f32.mrb[17].mxu0  ;;  %s844_s30 = scalar_lea.vmem %s635_s29, 16  ;;  %s848_s4 = scalar_lea.vmem %s635_s29, 32 }
 0x10d   :  { %v508_v15 = vmax.f32 %v500_v31, %v507_v8  ;;  %v505_v30 = vsel %vm480_vm2, %v462_v1, -inf  ;;  %v400_v17 = vmax.f32 %v305_v11, 0.0  ;;  %v537_v43 = vsel %vm480_vm2, %v478_v26, -inf  ;;  %p845_p0 = scmp.ne.s32.totalorder %s635_s29, %s844_s30  ;;  %p849_p1 = scmp.lt.s32.totalorder %s635_s29, %s635_s29 }
 0x10e   :  { %v506_v18 = vmax.f32 %v498_v35, %v505_v30  ;;  %v465_v19 = vmul.f32 %v433_v4, %v401_v10  ;;  %p850_p2 = scmp.lt.s32.totalorder %s848_s4, %s844_s30 }
 0x10f   :  { %v516_v22 = vmax.f32 %v508_v15, %v515_v29  ;;  %v464_v24 = vmul.f32 %v432_v12, %v400_v17  ;;  %v529_v29 = vsel %vm480_vm2, %v474_v16, -inf }
 0x110   :  { %v514_v28 = vmax.f32 %v506_v18, %v513_v34  ;;  %v511_v31 = vsel %vm480_vm2, %v465_v19, -inf  ;;  %p851_p3 = por %p850_p2, %p849_p1 }
 0x111   :  { %v524_v32 = vmax.f32 %v516_v22, %v523_v57  ;;  %v512_v33 = vmax.f32 %v504_v52, %v511_v31  ;;  %v509_v35 = vsel %vm480_vm2, %v464_v24, -inf }
 0x112   :  { %v522_v36 = vmax.f32 %v514_v28, %v521_v63  ;;  %v510_v37 = vmax.f32 %v502_v58, %v509_v35  ;;  %p852_p4 = pnand %p851_p3, %p845_p0 }
 0x113   :  { %v532_v34 = vmax.f32 %v524_v32, %v531_v13  ;;  %v520_v40 = vmax.f32 %v512_v33, %v1174_v38 }
 0x114   :  { %v530_v45 = vmax.f32 %v522_v36, %v529_v29  ;;  %v518_v48 = vmax.f32 %v510_v37, %v1184_v46 }
 0x115   :  { %v528_v50 = vmax.f32 %v520_v40, %v527_v44  ;;  %v540_v23 = vmax.f32 %v532_v34, %v539_v39 }
 0x116   :  { %v526_v52 = vmax.f32 %v518_v48, %v525_v49  ;;  %v538_v53 = vmax.f32 %v530_v45, %v537_v43 }
 0x117   :  { %v536_v54 = vmax.f32 %v528_v50, %v535_v51 }
 0x118   :  { %v534_v38 = vmax.f32 %v526_v52, %v533_v55  ;;  %v542_v56 = vmax.f32 %v538_v53, %v540_v23 }
 0x11a   :  { %v541_v57 = vmax.f32 %v534_v38, %v536_v54 }
 0x11c   :  { %v543_v58 = vmax.f32 %v541_v57, %v542_v56 }
 0x11e   :  { %v544_v60 = vrot.slane %v543_v58, 4 }
 0x120   :  { %v545_v41 = vmax.f32 %v543_v58, %v544_v60 }
 0x122   :  { %v546_v61 = vrot.slane %v545_v41, 2 }
 0x124   :  { %v547_v63 = vmax.f32 %v545_v41, %v546_v61 }
 0x126   :  { %v548_v46 = vrot.slane %v547_v63, 1 }
 0x128   :  { %v549_v59 = vmax.f32 %v547_v63, %v548_v46 }
 0x12a   :  { %802 = vmatmul.mubr.msk.f32.vlgmr.msra.gmra.mrb[14].mxu1 %vm480_vm2, %v549_v59 }
 0x1fd   :  { %v619_v1 = vpop.f32.mrb[14].mxu1 }
 0x1fe   :  { %v623_v3 = vmax.f32 %v619_v1, 0.0  ;;  %v803_v4 = vpop.f32.mrb[15].mxu1 }
 0x200   :  { %v624_v47 = vmul.f32 0.0, %v623_v3 }
 0x202   :  { %v625_v62 = vadd.f32 1.0, %v624_v47 }
 0x204   :  { %627 = vst.msk [vmem:[#allocation2] sm:$0x1] %vm626_vm3, %v625_v62 }
 0x205   :  { %855 = shalt.err (!%p852_p4)
}
 0x206   :  { %s856_s7 = scalar_lea.hbm %s1257_s3, 16 }
 0x207   :  { %p857_p5 = scmp.ne.s32.totalorder %s1257_s3, %s856_s7  ;;  %p860_p6 = scmp.lt.u32.totalorder %s856_s7, %s1257_s3 }
 0x209   :  { %p862_p7 = pnand %p860_p6, %p857_p5 }
 0x20b   :  { %865 = shalt.err (!%p862_p7)
}
 0x20c   :  { %637 = dma.vmem_to_hbm [thread:$0]  %s635_s29, 16, %s1257_s3, [#allocation3]  }
 0x20d   :  { %866 = dma.done.wait [#allocation3], 16  }
 0x20e   :  { %867 = vsyncadd [#allocation3], 4294967280 }
 0x20f   :  { %641 = vsyncpa [#allocation3], 1 }

</bundles_post_ra>
